<compile_context>
chip_gen: v5e
topology: v5e:2x2
jax: 0.10.0
libtpu: 0.0.40
codegen_flags: <defaults>
</compile_context>

<pallas_src>
import functools

import jax
import jax.numpy as jnp
from jax.experimental import pallas as pl
from jax.experimental.pallas import tpu as pltpu

POS_WEIGHT = 5.0            # module __init__ default
LANE = 128
SUBLANE = 8
MAX_TILE_R = 4096           # rows per grid block: 4096*128*4B = 2 MiB (f32)
VMEM_LIMIT_BYTES = 32 * 1024 * 1024   # raises v5e's 16 MiB scoped default


def _round_up(a, b):
    return -(-a // b) * b


def _weighted_bce_elem(x, t, pos_weight, binary_targets):
    """Elementwise weighted BCE matching F.binary_cross_entropy semantics
    (log terms clamped at -100, like PyTorch). Weight scales the whole term."""
    if binary_targets:
        # One log instead of two; only valid when targets are exactly {0, 1}.
        pos = t > 0.5
        p = jnp.where(pos, x, 1.0 - x)
        bce = -jnp.maximum(jnp.log(p), -100.0)
        w = jnp.where(pos, jnp.float32(pos_weight), jnp.float32(1.0))
        return w * bce
    log_x = jnp.maximum(jnp.log(x), -100.0)
    log_1mx = jnp.maximum(jnp.log(1.0 - x), -100.0)
    bce = -(t * log_x + (1.0 - t) * log_1mx)
    w = t * pos_weight + (1.0 - t)
    return w * bce


def _partial_sum_kernel(x_ref, t_ref, o_ref, *, pos_weight, tile_r, n_valid,
                        masked, binary_targets):
    """Streams the (tile_r, LANE) block in 8-row chunks, accumulating into an
    (8, LANE) f32 register-resident accumulator (no big VMEM temporary)."""
    nsteps = tile_r // SUBLANE

    if masked:
        # NOTE: flat indices assumed < 2**31 (int32 index math).
        block_base = pl.program_id(0) * (tile_r * LANE)
        idx0 = (jax.lax.broadcasted_iota(jnp.int32, (SUBLANE, LANE), 0) * LANE
                + jax.lax.broadcasted_iota(jnp.int32, (SUBLANE, LANE), 1))

    def body(s, acc):
        r0 = pl.multiple_of(s * SUBLANE, SUBLANE)
        x = x_ref[pl.ds(r0, SUBLANE), :].astype(jnp.float32)
        t = t_ref[pl.ds(r0, SUBLANE), :].astype(jnp.float32)
        loss = _weighted_bce_elem(x, t, pos_weight, binary_targets)
        if masked:
            gidx = block_base + r0 * LANE + idx0
            loss = jnp.where(gidx < n_valid, loss, 0.0)
        return acc + loss

    acc = jax.lax.fori_loop(0, nsteps, body,
                            jnp.zeros((SUBLANE, LANE), jnp.float32),
                            unroll=min(8, nsteps))
    o_ref[...] = acc


def _elem_kernel(x_ref, t_ref, o_ref, *, pos_weight, tile_r, binary_targets):
    """'none' reduction: elementwise loss, streamed in 8-row chunks, stored in
    the output dtype (input dtype) to halve write traffic for narrow dtypes."""
    nsteps = tile_r // SUBLANE

    def body(s, carry):
        r0 = pl.multiple_of(s * SUBLANE, SUBLANE)
        x = x_ref[pl.ds(r0, SUBLANE), :].astype(jnp.float32)
        t = t_ref[pl.ds(r0, SUBLANE), :].astype(jnp.float32)
        o_ref[pl.ds(r0, SUBLANE), :] = _weighted_bce_elem(
            x, t, pos_weight, binary_targets).astype(o_ref.dtype)
        return carry

    jax.lax.fori_loop(0, nsteps, body, 0, unroll=min(8, nsteps))


def weighted_bce_loss(inputs, targets, pos_weight=POS_WEIGHT, reduction="mean",
                      assume_binary_targets=False):
    if targets.shape != inputs.shape:
        targets = jnp.broadcast_to(targets, inputs.shape)
    orig_shape = inputs.shape
    out_dtype = inputs.dtype
    n = int(inputs.size)

    # --- lane-dense (rows, 128) slab in the NATIVE dtype (cast on-chip) ------
    rows_min = pl.cdiv(n, LANE)
    if (n % LANE == 0) and rows_min >= SUBLANE:
        rows, pad = rows_min, 0            # zero-copy reshape, no padding
    else:
        rows = _round_up(max(rows_min, SUBLANE), SUBLANE)
        pad = rows * LANE - n

    xf = inputs.reshape(-1)
    tf = targets.reshape(-1)
    if pad:
        # TODO(synk): a manual-DMA tail path (pl.ANY + make_async_copy) would
        # avoid this full-array pad pass for ragged shapes; the pad value is
        # irrelevant because out-of-range elements are masked in-kernel.
        xf = jnp.pad(xf, (0, pad))
        tf = jnp.pad(tf, (0, pad))
    x2d = xf.reshape(rows, LANE)
    t2d = tf.reshape(rows, LANE)

    # --- tiling: big blocks, but never larger than the array, and >= 2 grid
    # blocks when possible so both v7x TensorCores get work --------------------
    tile_r = min(MAX_TILE_R, (rows // SUBLANE) * SUBLANE)
    if pl.cdiv(rows, tile_r) == 1 and rows > SUBLANE:
        tile_r = max(SUBLANE, ((rows // 2) // SUBLANE) * SUBLANE)
    num_blocks = pl.cdiv(rows, tile_r)
    # Mask when explicit padding exists or the last grid block is a boundary
    # block (its out-of-range rows contain unspecified VMEM data).
    masked = (pad > 0) or (rows % tile_r != 0)

    in_spec = pl.BlockSpec((tile_r, LANE), lambda i: (i, 0))
    cparams = pltpu.CompilerParams(
        dimension_semantics=("parallel",),
        vmem_limit_bytes=VMEM_LIMIT_BYTES)

    if reduction in ("mean", "sum"):
        kernel = functools.partial(
            _partial_sum_kernel, pos_weight=float(pos_weight), tile_r=tile_r,
            n_valid=n, masked=masked, binary_targets=assume_binary_targets)
        partials = pl.pallas_call(
            kernel,
            out_shape=jax.ShapeDtypeStruct((num_blocks * SUBLANE, LANE),
                                           jnp.float32),
            grid=(num_blocks,),
            in_specs=[in_spec, in_spec],
            out_specs=pl.BlockSpec((SUBLANE, LANE), lambda i: (i, 0)),
            compiler_params=cparams,
        )(x2d, t2d)
        total = jnp.sum(partials)           # tiny final reduce outside kernel
        if reduction == "mean":
            total = total / jnp.float32(n)
        return total.astype(out_dtype)
    else:  # 'none'
        kernel = functools.partial(
            _elem_kernel, pos_weight=float(pos_weight), tile_r=tile_r,
            binary_targets=assume_binary_targets)
        out2d = pl.pallas_call(
            kernel,
            out_shape=jax.ShapeDtypeStruct((rows, LANE), out_dtype),
            grid=(num_blocks,),
            in_specs=[in_spec, in_spec],
            out_specs=in_spec,
            compiler_params=cparams,
        )(x2d, t2d)
        if pad:
            return out2d.reshape(-1)[:n].reshape(orig_shape)
        return out2d.reshape(orig_shape)


def _reference(inputs, targets, pos_weight):
    logx = jnp.maximum(jnp.log(inputs), -100.0)
    log1mx = jnp.maximum(jnp.log(1.0 - inputs), -100.0)
    return ((targets * pos_weight + (1.0 - targets)) *
            (-(targets * logx + (1.0 - targets) * log1mx)))


if __name__ == "__main__":
    key = jax.random.PRNGKey(0)
    kx, kt = jax.random.split(key)
    B, C, H, W = 2, 4, 16, 16
    inputs = jax.nn.sigmoid(jax.random.normal(kx, (B, C, H, W), jnp.float32))
    targets = (jax.random.uniform(kt, (B, C, H, W)) > 0.7).astype(jnp.float32)

    ref_elem = _reference(inputs, targets, 5.0)

    # default module config: pos_weight=5.0, reduction='mean'
    loss = jax.block_until_ready(
        weighted_bce_loss(inputs, targets, pos_weight=5.0, reduction="mean"))
    assert jnp.allclose(loss, ref_elem.mean(), rtol=1e-5, atol=1e-6), (
        loss, ref_elem.mean())

    # 'sum' and 'none' paths
    loss_sum = jax.block_until_ready(
        weighted_bce_loss(inputs, targets, reduction="sum"))
    assert jnp.allclose(loss_sum, ref_elem.sum(), rtol=1e-5), (
        loss_sum, ref_elem.sum())

    loss_none = jax.block_until_ready(
        weighted_bce_loss(inputs, targets, reduction="none"))
    assert loss_none.shape == inputs.shape
    assert jnp.allclose(loss_none, ref_elem, rtol=1e-5, atol=1e-6)

    # binary-target fast path (one log) on the same data
    loss_bin = jax.block_until_ready(
        weighted_bce_loss(inputs, targets, reduction="mean",
                          assume_binary_targets=True))
    assert jnp.allclose(loss_bin, ref_elem.mean(), rtol=1e-5, atol=1e-6)

    # ragged shape exercises the padded + in-kernel-masked path
    kr1, kr2 = jax.random.split(jax.random.PRNGKey(1))
    ri = jax.nn.sigmoid(jax.random.normal(kr1, (2, 3, 7, 5), jnp.float32))
    rt = (jax.random.uniform(kr2, (2, 3, 7, 5)) > 0.5).astype(jnp.float32)
    rloss = jax.block_until_ready(
        weighted_bce_loss(ri, rt, pos_weight=5.0, reduction="mean"))
    rref = _reference(ri, rt, 5.0).mean()
    assert jnp.allclose(rloss, rref, rtol=1e-5, atol=1e-6), (rloss, rref)

    # lane-aligned but non-tile-divisible rows -> boundary-block masked path
    kb1, kb2 = jax.random.split(jax.random.PRNGKey(2))
    bi = jax.nn.sigmoid(jax.random.normal(kb1, (1, 1, 40, 128), jnp.float32))
    bt = (jax.random.uniform(kb2, (1, 1, 40, 128)) > 0.6).astype(jnp.float32)
    bloss = jax.block_until_ready(
        weighted_bce_loss(bi, bt, pos_weight=5.0, reduction="mean"))
    bref = _reference(bi, bt, 5.0).mean()
    assert jnp.allclose(bloss, bref, rtol=1e-5, atol=1e-6), (bloss, bref)

    print("KERNEL_OK")
</pallas_src>

<mosaic_0001>
module attributes {stable_mosaic.version = 11 : i64} {
  func.func @_partial_sum_kernel(%arg0: i32, %arg1: memref<8x128xf32, #tpu.memory_space<vmem>>, %arg2: memref<8x128xf32, #tpu.memory_space<vmem>>, %arg3: memref<8x128xf32, #tpu.memory_space<vmem>>) attributes {dimension_semantics = [#tpu.dimension_semantics<parallel>], iteration_bounds = array<i64: 2>, scalar_prefetch = 0 : i64, scratch_operands = 0 : i64, tpu.core_type = #tpu.core_type<tc>, window_params = [{transform_indices = @transform_0, window_bounds = array<i64: 8, 128>}, {transform_indices = @transform_1, window_bounds = array<i64: 8, 128>}, {transform_indices = @transform_2, window_bounds = array<i64: 8, 128>}]} {
    %cst = arith.constant 0.000000e+00 : f32
    %0 = vector.broadcast %cst : f32 to vector<8x128xf32>
    %c0_i32 = arith.constant 0 : i32
    %c8_i32 = arith.constant 8 : i32
    %1 = arith.muli %c0_i32, %c8_i32 : i32
    %2 = tpu.assume_multiple %1, 8 : i32
    %3 = arith.index_cast %2 : i32 to index
    %c0 = arith.constant 0 : index
    %4 = vector.load %arg1[%3, %c0] : memref<8x128xf32, #tpu.memory_space<vmem>>, vector<8x128xf32>
    %5 = arith.index_cast %2 : i32 to index
    %c0_0 = arith.constant 0 : index
    %6 = vector.load %arg2[%5, %c0_0] : memref<8x128xf32, #tpu.memory_space<vmem>>, vector<8x128xf32>
    %7 = math.log %4 : vector<8x128xf32>
    %cst_1 = arith.constant -1.000000e+02 : f32
    %8 = vector.broadcast %cst_1 : f32 to vector<8x128xf32>
    %9 = arith.maximumf %7, %8 : vector<8x128xf32>
    %cst_2 = arith.constant 1.000000e+00 : f32
    %10 = vector.broadcast %cst_2 : f32 to vector<8x128xf32>
    %11 = arith.subf %10, %4 : vector<8x128xf32>
    %12 = math.log %11 : vector<8x128xf32>
    %cst_3 = arith.constant -1.000000e+02 : f32
    %13 = vector.broadcast %cst_3 : f32 to vector<8x128xf32>
    %14 = arith.maximumf %12, %13 : vector<8x128xf32>
    %15 = arith.mulf %6, %9 : vector<8x128xf32>
    %cst_4 = arith.constant 1.000000e+00 : f32
    %16 = vector.broadcast %cst_4 : f32 to vector<8x128xf32>
    %17 = arith.subf %16, %6 : vector<8x128xf32>
    %18 = arith.mulf %17, %14 : vector<8x128xf32>
    %19 = arith.addf %15, %18 : vector<8x128xf32>
    %cst_5 = arith.constant 0.000000e+00 : f32
    %20 = vector.broadcast %cst_5 : f32 to vector<8x128xf32>
    %21 = arith.subf %20, %19 : vector<8x128xf32>
    %cst_6 = arith.constant 5.000000e+00 : f32
    %22 = vector.broadcast %cst_6 : f32 to vector<8x128xf32>
    %23 = arith.mulf %6, %22 : vector<8x128xf32>
    %cst_7 = arith.constant 1.000000e+00 : f32
    %24 = vector.broadcast %cst_7 : f32 to vector<8x128xf32>
    %25 = arith.subf %24, %6 : vector<8x128xf32>
    %26 = arith.addf %23, %25 : vector<8x128xf32>
    %27 = arith.mulf %26, %21 : vector<8x128xf32>
    %28 = arith.addf %0, %27 : vector<8x128xf32>
    %c1_i32 = arith.constant 1 : i32
    %c0_8 = arith.constant 0 : index
    %c0_9 = arith.constant 0 : index
    %29 = vector.load %arg3[%c0_8, %c0_9] : memref<8x128xf32, #tpu.memory_space<vmem>>, vector<8x128xf32>
    tpu.vector_store %arg3[%c0_8, %c0_9], %28 {strides = array<i32>} : memref<8x128xf32, #tpu.memory_space<vmem>>, vector<8x128xf32>,
    return
  }
  func.func @transform_0(%arg0: i32) -> (i32, i32) {
    %c0_i32 = arith.constant 0 : i32
    %c0_i32_0 = arith.constant 0 : i32
    return %arg0, %c0_i32 : i32, i32
  }
  func.func @transform_1(%arg0: i32) -> (i32, i32) {
    %c0_i32 = arith.constant 0 : i32
    %c0_i32_0 = arith.constant 0 : i32
    return %arg0, %c0_i32 : i32, i32
  }
  func.func @transform_2(%arg0: i32) -> (i32, i32) {
    %c0_i32 = arith.constant 0 : i32
    %c0_i32_0 = arith.constant 0 : i32
    return %arg0, %c0_i32 : i32, i32
  }
}

</mosaic_0001>

<bundles_post_ra>
// kernel: tpu_custom_call.1
= control target key start
LH: loop header
LB: loop body
LE: loop exit
PB: predicated region body
PF: predicated region fallthrough
CT: control target
= control target key end

     0   :  { %7 = vsyncpa [#allocation3], 0  ;;  %s710_s0 = inlined_call_operand.hbm [shape: f32[16,128], index: 0, kind: input, shape index: {}]   ;;  %s711_s1 = inlined_call_operand.hbm [shape: f32[16,128], index: 1, kind: input, shape index: {}]   ;;  %s712_s2 = inlined_call_operand.hbm [shape: f32[16,128], index: 2, kind: output, shape index: {}]  }
   0x1   :  { %9 = vsyncpa [#allocation3 + $0x1], 0 }
   0x2   :  { %10 = vsyncpa [#allocation6], 0 }
   0x3   :  { %12 = vsyncpa [#allocation6 + $0x1], 0 }
   0x4   :  { %13 = vsyncpa [#allocation4], 0 }
   0x5   :  { %15 = vsyncpa [#allocation4 + $0x1], 0  ;;  %s545_s9 = smov 0   ;;  %s547_s10 = smov 0  }
   0x6   :  { %s549_s11 = smov 0   ;;  %s551_s12 = smov 0  }
   0x7 LB: > { %s566_s13 = sadd.s32 4294967295, %s528_s12   ;;  %s328_s14 = sadd.s32 4294967294, %s528_s12   ;;  %s528_s12 = sphi %s551_s12, %s723_s12   ;;  %s524_s11 = sphi %s549_s11, %s722_s11   ;;  %s520_s10 = sphi %s547_s10, %s721_s10   ;;  %s516_s9 = sphi %s545_s9, %s720_s9  }
   0x8   : > { %s570_s15 = sadd.s32 1, %s528_s12   ;;  %s28_s16 = sadd.s32 1, %s524_s11 }
   0x9   : > { %s25_s17 = ssub.s32 %s528_s12, %s570_s15  ;;  %p35_p0 = scmp.ne.s32.totalorder %s524_s11, %s520_s10 }
   0xa   : > { %p26_p1 = scmp.eq.s32.totalorder %s25_s17, 0  ;;  %p36_p2 = scmp.eq.s32.totalorder %s528_s12, 0 }
   0xb   : > { %p41_p3 = scmp.ne.s32.totalorder %s520_s10, %s516_s9  ;;  %p42_p4 = scmp.eq.s32.totalorder %s566_s13, 0 }
   0xc   : > { %s582_s18 = scalar_select %p26_p1, %s524_s11, %s28_s16  }
   0xd   : > { %p584_p5 = por %p36_p2, %p35_p0  ;;  %p588_p6 = por %p42_p4, %p41_p3 }
   0xe   : > { %p91_p7 = scmp.eq.s32.totalorder %s566_s13, 1  ;;  %p97_p8 = scmp.eq.s32.totalorder %s328_s14, 1 }
   0xf   : > { %p360_p10 = scmp.lt.s32.totalorder %s528_s12, 2  ;;  %s604_s23 = sand.u32 1, %s524_s11  }
  0x10   : > { %p595_p11 = por %p91_p7, %p35_p0  ;;  %p599_p12 = por %p97_p8, %p41_p3 }
  0x11   : > { %s332_s24 = sshll.u32 %s528_s12, 3  ;;  %s331_s25 = sshll.u32 %s604_s23, 3 }
  0x12   : > { %s125_s28 = scalar_lea.hbm %s710_s0, %s332_s24  ;;  %s121_s30 = scalar_lea.vmem [#allocation2], %s331_s25 }
  0x13   : > { %s127_s29 = sshll.u32 %s125_s28, 4  ;;  %s129_s3 = sshll.u32 %s121_s30, 4  ;;  %s128_s29 = int_to_ptr.hbm [resolvable:$true] %s127_s29  ;;  %s130_s3 = int_to_ptr.vmem [resolvable:$true] %s129_s3 }
  0x14   : > { %p613_p13 = pnand %p360_p10, %p584_p5  ;;  %p335_p0 = scmp.ge.s32.totalorder %s528_s12, 1 }
  0x15   : > { %p153_p1 = scmp.lt.s32.totalorder %s528_s12, 3  ;;  %s118_s5 = scalar_lea.sflag [#allocation3], %s604_s23 }
  0x16   : > { %s398_s6 = sshra.s32 %s128_s29, 4  ;;  %p402_p3 = pneg %p613_p13  ;;  %s399_s6 = int_to_ptr.hbm [resolvable:$true] %s398_s6 }
  0x17   : > { %s400_s7 = scalar_lea.hbm %s399_s6, 8  ;;  %s405_s16 = scalar_lea.hbm %s710_s0, 16 }
  0x18   : > { %p401_p2 = scmp.ne.s32.totalorder %s399_s6, %s400_s7  ;;  %p406_p5 = scmp.lt.s32.totalorder %s399_s6, %s710_s0 }
  0x19   : > { %p407_p8 = scmp.lt.s32.totalorder %s405_s16, %s400_s7 }
  0x1a   : > { %p403_p4 = pnand %p402_p3, %p401_p2 }
  0x1b   : > { %p408_p10 = por %p407_p8, %p406_p5 }
  0x1c   : > { %p404_p7 = pneg %p403_p4 }
  0x1e   : > { %p409_p9 = pnand %p408_p10, %p404_p7 }
  0x20   : > { %412 = shalt.err (!%p409_p9)
}
  0x21   : > { %352 = dma.hbm_to_vmem [thread:$0]  (!%p613_p13), %s128_s29, 128, %s130_s3, %s118_s5  }
  0x22   : > { %p637_p2 = pnand %p335_p0, %p153_p1  ;;  %s144_s30 = scalar_lea.hbm %s711_s1, %s332_s24 }
  0x23   : > { %s146_s6 = sshll.u32 %s144_s30, 4  ;;  %s140_s7 = scalar_lea.vmem [#allocation5], %s331_s25  ;;  %s147_s6 = int_to_ptr.hbm [resolvable:$true] %s146_s6 }
  0x24   : > { %s148_s8 = sshll.u32 %s140_s7, 4  ;;  %s137_s14 = scalar_lea.sflag [#allocation6], %s604_s23  ;;  %s149_s8 = int_to_ptr.vmem [resolvable:$true] %s148_s8 }
  0x25   : > { %s428_s16 = sshra.s32 %s147_s6, 4  ;;  %s435_s5 = scalar_lea.hbm %s711_s1, 16  ;;  %s429_s16 = int_to_ptr.hbm [resolvable:$true] %s428_s16 }
  0x26   : > { %s430_s17 = scalar_lea.hbm %s429_s16, 8  ;;  %p436_p4 = scmp.lt.s32.totalorder %s429_s16, %s711_s1 }
  0x27   : > { %p431_p9 = scmp.ne.s32.totalorder %s429_s16, %s430_s17  ;;  %p437_p7 = scmp.lt.s32.totalorder %s435_s5, %s430_s17 }
  0x29   : > { %p433_p0 = pnand %p431_p9, %p402_p3  ;;  %p438_p5 = por %p437_p7, %p436_p4 }
  0x2b   : > { %p434_p1 = pneg %p433_p0 }
  0x2d   : > { %p439_p8 = pnand %p438_p5, %p434_p1 }
  0x2f   : > { %442 = shalt.err (!%p439_p8)
}
  0x30   : > { %355 = dma.hbm_to_vmem [thread:$0]  (!%p613_p13), %s147_s6, 128, %s149_s8, %s137_s14  }
  0x31   : > { %157 = sbr.rel (%p637_p2) target bundleno = 82 (0x52), region = 28  ;;  %s659_s23 = sand.u32 (!%p637_p2), 1, %s520_s10  }
  0x32   : > { %s662_s25 = sshll.u32 (!%p637_p2), %s659_s23, 3  ;;  %s160_s27 = scalar_lea.sflag (!%p637_p2), [#allocation3], %s659_s23 }
  0x33   : > { %s163_s28 = scalar_lea.vmem (!%p637_p2), [#allocation2], %s662_s25 }
  0x36   : > { %503 = dma.done.wait (%p588_p6), %s160_s27, 128  }
  0x37   : > { %505 = vsyncadd (%p588_p6), %s160_s27, 4294967168  ;;  %s170_s4 = scalar_lea.sflag [#allocation6], %s659_s23  ;;  %s173_s26 = scalar_lea.vmem [#allocation5], %s662_s25 }
  0x38   : > { %507 = dma.done.wait (%p588_p6), %s170_s4, 128  }
  0x39   : > { %509 = vsyncadd (%p588_p6), %s170_s4, 4294967168  ;;  %v200_v0 = vld [vmem:[%s163_s28] sm:$0xff]  ;;  %v201_v3 = vld [vmem:[%s173_s26] sm:$0xff]  ;;  %s340_s30 = sshll.u32 %s566_s13, 3  ;;  %s199_s8 = scalar_lea.vmem [#allocation7], %s662_s25 }
  0x3a   : > { %394 = vlog2.f32 %v200_v0  ;;  %v205_v1 = vsub.f32 1.0, %v200_v0  ;;  %v210_v8 = vsub.f32 1.0, %v201_v3  ;;  %v214_v11 = vmul.f32 5.0, %v201_v3  ;;  %s230_s7 = scalar_lea.hbm %s712_s2, %s340_s30  ;;  %s232_s14 = sshll.u32 %s199_s8, 4  ;;  %s233_s14 = int_to_ptr.vmem [resolvable:$true] %s232_s14 }
  0x3b   : > { %s234_s16 = sshll.u32 %s230_s7, 4  ;;  %s220_s13 = scalar_lea.sflag [#allocation4], %s659_s23  ;;  %s235_s16 = int_to_ptr.hbm [resolvable:$true] %s234_s16 }
  0x3c   : > { %396 = vlog2.f32 %v205_v1  ;;  %v215_v14 = vadd.f32 %v214_v11, %v210_v8  ;;  %s472_s17 = sshra.s32 %s235_s16, 4  ;;  %s478_s19 = scalar_lea.hbm %s712_s2, 16  ;;  %s473_s17 = int_to_ptr.hbm [resolvable:$true] %s472_s17 }
  0x3d   : > { %s474_s29 = scalar_lea.hbm %s473_s17, 8  ;;  %p479_p10 = scmp.lt.s32.totalorder %s473_s17, %s712_s2 }
  0x3e   : > { %p475_p6 = scmp.ne.s32.totalorder %s473_s17, %s474_s29  ;;  %p480_p2 = scmp.lt.s32.totalorder %s478_s19, %s474_s29 }
  0x40   : > { %v395_v2 = vpop.eup %394  ;;  %p476_p13 = pnand %p475_p6, %p595_p11  ;;  %p481_p9 = por %p480_p2, %p479_p10 }
  0x41   : > { %v203_v4 = vmul.f32 0.6931472, %v395_v2 }
  0x42   : > { %v397_v5 = vpop.eup %396  ;;  %p477_p3 = pneg %p476_p13 }
  0x43   : > { %v204_v6 = vmax.f32 %v203_v4, -100.0  ;;  %v207_v7 = vmul.f32 0.6931472, %v397_v5 }
  0x44   : > { %p482_p0 = pnand %p481_p9, %p477_p3 }
  0x45   : > { %v208_v9 = vmax.f32 %v207_v7, -100.0  ;;  %v209_v10 = vmul.f32 %v204_v6, %v201_v3 }
  0x47   : > { %v211_v12 = vmul.f32 %v210_v8, %v208_v9 }
  0x49   : > { %v212_v13 = vadd.f32 %v211_v12, %v209_v10 }
  0x4b   : > { %v213_v15 = vsub.f32 0.0, %v212_v13 }
  0x4d   : > { %v216_v16 = vmul.f32 %v215_v14, %v213_v15 }
  0x4f   : > { %218 = vst [vmem:[%s199_s8] sm:$0xff] %v216_v16 }
  0x50   : > { %485 = shalt.err (!%p482_p0)
}
  0x51   : > { %347 = dma.vmem_to_hbm [thread:$0]  (%p595_p11), %s233_s14, 128, %s235_s16, %s220_s13  }
  0x52 PF: > { %s246_s23 = sand.u32 1, %s516_s9   ;;  %p719_p1 = scmp.ge.s32.totalorder %s528_s12, 2 }
  0x53   : > { %s247_s27 = scalar_lea.sflag [#allocation4], %s246_s23 }
  0x54   : > { %p357_p4 = pnand %p719_p1, %p599_p12 }
  0x56   : > { %p358_p7 = pneg %p357_p4 }
  0x58   : > { %511 = dma.done.wait (%p358_p7), %s247_s27, 128  }
  0x59   : > { %513 = vsyncadd (%p358_p7), %s247_s27, 4294967168  ;;  %p18_p5 = scmp.ge.s32.totalorder %s570_s15, 4   ;;  %s720_s9 = smov %s520_s10 }
  0x5a   : > { %s721_s10 = smov %s524_s11  ;;  %s722_s11 = smov %s582_s18 }
  0x5b   : > { %s723_s12 = smov %s570_s15  ;;  %20 = sbr.rel (!%p18_p5) target bundleno = 7 (0x7), region = 86 }
  0x60   :  { %253 = vsyncpa [#allocation3], 1 }
  0x61   :  { %255 = vsyncpa [#allocation3 + $0x1], 1 }
  0x62   :  { %256 = vsyncpa [#allocation6], 1 }
  0x63   :  { %258 = vsyncpa [#allocation6 + $0x1], 1 }
  0x64   :  { %259 = vsyncpa [#allocation4], 1 }
  0x65   :  { %261 = vsyncpa [#allocation4 + $0x1], 1 }

</bundles_post_ra>
